<compile_context>
chip_gen: v5e
topology: v5e:2x2
jax: 0.10.0
libtpu: 0.0.40
codegen_flags: <defaults>
</compile_context>

<pallas_src>
import math
import functools

import numpy as np
import jax
import jax.numpy as jnp
from jax.experimental import pallas as pl
from jax.experimental.pallas import tpu as pltpu

LANE = 128
SUBLANE = 8


def _round_up(x, m):
    return ((x + m - 1) // m) * m


def _pad_axis(x, target, axis):
    pad = target - x.shape[axis]
    if pad <= 0:
        return x
    widths = [(0, 0)] * x.ndim
    widths[axis] = (0, pad)
    return jnp.pad(x, widths)


# ----------------------------------------------------------------------------
# Sinusoidal positional encoding (vectorized; matches getPositionEncoding)
# ----------------------------------------------------------------------------
def get_position_encoding(seq_len, d, n=10000):
    k = np.arange(seq_len, dtype=np.float64)[:, None]
    i = np.arange(d // 2, dtype=np.float64)[None, :]
    denom = np.power(float(n), 2.0 * i / float(d))
    P = np.zeros((seq_len, d), dtype=np.float32)
    P[:, 0::2] = np.sin(k / denom)
    P[:, 1::2] = np.cos(k / denom)
    return jnp.asarray(P, dtype=jnp.float32)


# ----------------------------------------------------------------------------
# Pallas kernel: pos-add + fused multi-head attention + output proj + FFN
# ----------------------------------------------------------------------------
def decoder_kernel(num_heads, compute_dtype, block_q, kseq_valid,
                   wemb_ref, pos_ref, pemb_ref,
                   wq_ref, bq_ref, wk_ref, bk_ref, wv_ref, bv_ref,
                   wo_ref, bo_ref, w1_ref, b1_ref, w2_ref, b2_ref,
                   out_ref):
    f32 = jnp.float32
    cdt = compute_dtype
    H = num_heads

    # positional encoding added to the word-embedding tile (f32 math)
    x = (wemb_ref[...].astype(f32) + pos_ref[...]).astype(cdt)   # (bq, E_w)
    p = pemb_ref[...]                                            # (K,  E_p), cdt

    bq_rows, _ = x.shape
    kseq = p.shape[0]

    # broadcast embeddings across the head batch dim once (not per einsum)
    xh = jnp.broadcast_to(x[None], (H, bq_rows, x.shape[1]))
    ph = jnp.broadcast_to(p[None], (H, kseq, p.shape[1]))

    # fused per-head Q/K/V projections: (H, s, E) @ (H, E, D) -> (H, s, D)
    # note: 1/sqrt(head_dim) already folded into wq/bq host-side.
    q = jnp.einsum('hqe,hed->hqd', xh, wq_ref[...],
                   preferred_element_type=f32) + bq_ref[...]
    k = jnp.einsum('hke,hed->hkd', ph, wk_ref[...],
                   preferred_element_type=f32) + bk_ref[...]
    v = jnp.einsum('hke,hed->hkd', ph, wv_ref[...],
                   preferred_element_type=f32) + bv_ref[...]

    # batched attention scores, NT contraction (no explicit K transpose)
    att = jnp.einsum('hqd,hkd->hqk', q.astype(cdt), k.astype(cdt),
                     preferred_element_type=f32)                 # (H, bq, K)

    # triu(diagonal=1) mask with global query-row offset for this grid tile;
    # padded key columns (>= kseq_valid) are masked too (statically skipped
    # when kseq == kseq_valid).
    q0 = pl.program_id(0) * block_q
    row = jax.lax.broadcasted_iota(jnp.int32, att.shape, 1) + q0
    col = jax.lax.broadcasted_iota(jnp.int32, att.shape, 2)
    masked = col > row
    if kseq_valid < kseq:
        masked = masked | (col >= kseq_valid)
    att = jnp.where(masked, jnp.float32(-1e9), att)

    # stable softmax in f32; reciprocal on the (otherwise idle) EUP slot
    att_max = jnp.max(att, axis=-1, keepdims=True)
    ex = jnp.exp(att - att_max)
    denom = jnp.sum(ex, axis=-1, keepdims=True)
    soft = ex * pl.reciprocal(denom, approx=True)

    # batched PV
    sim = jnp.einsum('hqk,hkd->hqd', soft.astype(cdt), v.astype(cdt),
                     preferred_element_type=f32)                 # (H, bq, D)

    # per-head output projection summed over heads == concat(heads) @ Wo
    og = jnp.einsum('hqd,hde->hqe', sim.astype(cdt), wo_ref[...],
                    preferred_element_type=f32)                  # (H, bq, E_o)
    og = jnp.sum(og, axis=0) + bo_ref[...]                       # (bq, E_o)

    # feed-forward: Linear -> ReLU -> Linear (lane-dense 128-wide matmuls)
    h1 = jnp.dot(og.astype(cdt), w1_ref[...],
                 preferred_element_type=f32) + b1_ref[...]
    h1 = jnp.maximum(h1, 0.0)
    out = jnp.dot(h1.astype(cdt), w2_ref[...],
                  preferred_element_type=f32) + b2_ref[...]

    out_ref[...] = out.astype(out_ref.dtype)                     # lane-dense store


# ----------------------------------------------------------------------------
# Wrapper: host-side weight prep (transpose / head-split / scale-fold / pad)
# ----------------------------------------------------------------------------
def decoder_layer_pallas(wemb, pemb, params, num_heads,
                         compute_dtype=jnp.float32, block_q=128):
    f32 = jnp.float32
    Wseq, Wemb_dim = wemb.shape
    Pseq, Pemb_dim = pemb.shape
    new_dim = params["wq"].shape[0]
    H = num_heads
    D = new_dim // H
    F = params["w1"].shape[0]
    scale = 1.0 / math.sqrt(float(D))

    E_w = _round_up(Wemb_dim, LANE)
    E_p = _round_up(Pemb_dim, LANE)
    E_o = _round_up(Wemb_dim, LANE)
    F_p = _round_up(F, LANE)

    bq_rows = min(block_q, _round_up(Wseq, SUBLANE))
    Wseq_pad = _round_up(Wseq, bq_rows)
    Pseq_pad = _round_up(Pseq, SUBLANE)

    pos = get_position_encoding(Wseq, Wemb_dim)

    # weights -> (in, out) layout, split per head, fold scale into Wq/bq, pad to lanes
    wq_h = (params["wq"].T * scale).reshape(Wemb_dim, H, D).transpose(1, 0, 2)
    wk_h = params["wk"].T.reshape(Pemb_dim, H, D).transpose(1, 0, 2)
    wv_h = params["wv"].T.reshape(Pemb_dim, H, D).transpose(1, 0, 2)
    wo_h = params["wo"].T.reshape(H, D, Wemb_dim)

    wq_h = _pad_axis(wq_h, E_w, 1).astype(compute_dtype)
    wk_h = _pad_axis(wk_h, E_p, 1).astype(compute_dtype)
    wv_h = _pad_axis(wv_h, E_p, 1).astype(compute_dtype)
    wo_h = _pad_axis(wo_h, E_o, 2).astype(compute_dtype)

    bq_h = (params["bq"] * scale).reshape(H, 1, D).astype(f32)
    bk_h = params["bk"].reshape(H, 1, D).astype(f32)
    bv_h = params["bv"].reshape(H, 1, D).astype(f32)
    bo = _pad_axis(params["bo"][None, :], E_o, 1).astype(f32)

    w1 = _pad_axis(_pad_axis(params["w1"].T, E_o, 0), F_p, 1).astype(compute_dtype)
    b1 = _pad_axis(params["b1"][None, :], F_p, 1).astype(f32)
    w2 = _pad_axis(_pad_axis(params["w2"].T, F_p, 0), E_o, 1).astype(compute_dtype)
    b2 = _pad_axis(params["b2"][None, :], E_o, 1).astype(f32)

    wemb_p = _pad_axis(_pad_axis(wemb, Wseq_pad, 0), E_w, 1).astype(compute_dtype)
    pos_p = _pad_axis(_pad_axis(pos, Wseq_pad, 0), E_w, 1).astype(f32)
    pemb_p = _pad_axis(_pad_axis(pemb, Pseq_pad, 0), E_p, 1).astype(compute_dtype)

    args = (wemb_p, pos_p, pemb_p,
            wq_h, bq_h, wk_h, bk_h, wv_h, bv_h,
            wo_h, bo, w1, b1, w2, b2)

    qmap = lambda i: (i, 0)          # query-tiled
    pin2 = lambda i: (0, 0)          # VMEM-resident across the grid
    pin3 = lambda i: (0, 0, 0)

    in_specs = [
        pl.BlockSpec((bq_rows, E_w), qmap),     # wemb tile
        pl.BlockSpec((bq_rows, E_w), qmap),     # pos tile
        pl.BlockSpec((Pseq_pad, E_p), pin2),    # pemb (full, resident)
        pl.BlockSpec((H, E_w, D), pin3),        # wq (per head, pre-scaled)
        pl.BlockSpec((H, 1, D), pin3),          # bq
        pl.BlockSpec((H, E_p, D), pin3),        # wk
        pl.BlockSpec((H, 1, D), pin3),          # bk
        pl.BlockSpec((H, E_p, D), pin3),        # wv
        pl.BlockSpec((H, 1, D), pin3),          # bv
        pl.BlockSpec((H, D, E_o), pin3),        # wo (per head)
        pl.BlockSpec((1, E_o), pin2),           # bo
        pl.BlockSpec((E_o, F_p), pin2),         # w1
        pl.BlockSpec((1, F_p), pin2),           # b1
        pl.BlockSpec((F_p, E_o), pin2),         # w2
        pl.BlockSpec((1, E_o), pin2),           # b2
    ]
    out_spec = pl.BlockSpec((bq_rows, E_o), qmap)

    kernel = functools.partial(decoder_kernel, H, compute_dtype, bq_rows, Pseq)

    out = pl.pallas_call(
        kernel,
        out_shape=jax.ShapeDtypeStruct((Wseq_pad, E_o), jnp.float32),
        grid=(Wseq_pad // bq_rows,),
        in_specs=in_specs,
        out_specs=out_spec,
        compiler_params=pltpu.CompilerParams(
            dimension_semantics=("parallel",)),
    )(*args)

    return out[:Wseq, :Wemb_dim]


# ----------------------------------------------------------------------------
# Pure-JAX reference (mirrors the PyTorch forward) for correctness checking
# ----------------------------------------------------------------------------
def decoder_layer_ref(wemb, pemb, params, num_heads):
    Wseq, Wemb_dim = wemb.shape
    new_dim = params["wq"].shape[0]
    hd = new_dim // num_heads

    wemb = wemb + get_position_encoding(Wseq, Wemb_dim)
    q = wemb @ params["wq"].T + params["bq"]
    k = pemb @ params["wk"].T + params["bk"]
    v = pemb @ params["wv"].T + params["bv"]

    q = q.reshape(Wseq, num_heads, hd).transpose(1, 0, 2)
    k = k.reshape(pemb.shape[0], num_heads, hd).transpose(1, 0, 2)
    v = v.reshape(pemb.shape[0], num_heads, hd).transpose(1, 0, 2)

    att = jnp.einsum("hqd,hkd->hqk", q, k) / math.sqrt(hd)
    row = jnp.arange(att.shape[1])[:, None]
    col = jnp.arange(att.shape[2])[None, :]
    att = att + jnp.where(col > row, -1e9, 0.0)
    soft = jax.nn.softmax(att, axis=-1)
    sim = jnp.einsum("hqk,hkd->hqd", soft, v).transpose(1, 0, 2).reshape(Wseq, -1)
    og = sim @ params["wo"].T + params["bo"]
    h1 = jnp.maximum(og @ params["w1"].T + params["b1"], 0.0)
    return h1 @ params["w2"].T + params["b2"]


# ----------------------------------------------------------------------------
# Deterministic parameter init + driver
# ----------------------------------------------------------------------------
def init_params(key, Wemb_dim, Pemb_dim, new_dim, hidden_dim_ff):
    ks = jax.random.split(key, 12)
    s = 0.05
    return {
        "wq": s * jax.random.normal(ks[0], (new_dim, Wemb_dim), jnp.float32),
        "bq": s * jax.random.normal(ks[1], (new_dim,), jnp.float32),
        "wk": s * jax.random.normal(ks[2], (new_dim, Pemb_dim), jnp.float32),
        "bk": s * jax.random.normal(ks[3], (new_dim,), jnp.float32),
        "wv": s * jax.random.normal(ks[4], (new_dim, Pemb_dim), jnp.float32),
        "bv": s * jax.random.normal(ks[5], (new_dim,), jnp.float32),
        "wo": s * jax.random.normal(ks[6], (Wemb_dim, new_dim), jnp.float32),
        "bo": s * jax.random.normal(ks[7], (Wemb_dim,), jnp.float32),
        "w1": s * jax.random.normal(ks[8], (hidden_dim_ff, Wemb_dim), jnp.float32),
        "b1": s * jax.random.normal(ks[9], (hidden_dim_ff,), jnp.float32),
        "w2": s * jax.random.normal(ks[10], (Wemb_dim, hidden_dim_ff), jnp.float32),
        "b2": s * jax.random.normal(ks[11], (Wemb_dim,), jnp.float32),
    }


if __name__ == "__main__":
    # small shapes consistent with the module's forward
    Wemb_dim, Pemb_dim, new_dim = 32, 32, 32
    num_heads, hidden_dim_ff = 4, 64
    Wseq, Pseq = 8, 8

    key = jax.random.PRNGKey(0)
    k_w, k_p, k_params = jax.random.split(key, 3)
    wemb = jax.random.normal(k_w, (Wseq, Wemb_dim), jnp.float32)
    pemb = jax.random.normal(k_p, (Pseq, Pemb_dim), jnp.float32)
    params = init_params(k_params, Wemb_dim, Pemb_dim, new_dim, hidden_dim_ff)

    ref = decoder_layer_ref(wemb, pemb, params, num_heads)

    # f32 compute (all chips); tolerance covers the approximate EUP reciprocal
    out_f32 = decoder_layer_pallas(wemb, pemb, params, num_heads,
                                   compute_dtype=jnp.float32)
    out_f32 = jax.block_until_ready(out_f32)
    np.testing.assert_allclose(np.asarray(out_f32), np.asarray(ref),
                               rtol=5e-3, atol=5e-3)

    # bf16 MXU inputs / f32 accumulation and f32 softmax math (v6e / v7x lever)
    out_bf16 = decoder_layer_pallas(wemb, pemb, params, num_heads,
                                    compute_dtype=jnp.bfloat16)
    out_bf16 = jax.block_until_ready(out_bf16)
    np.testing.assert_allclose(np.asarray(out_bf16), np.asarray(ref),
                               rtol=5e-2, atol=5e-2)

    # ragged-shape check: exercises query-row padding and padded-key masking
    Wseq2, Pseq2 = 12, 10
    wemb2 = jax.random.normal(jax.random.PRNGKey(1), (Wseq2, Wemb_dim), jnp.float32)
    pemb2 = jax.random.normal(jax.random.PRNGKey(2), (Pseq2, Pemb_dim), jnp.float32)
    ref2 = decoder_layer_ref(wemb2, pemb2, params, num_heads)
    out2 = decoder_layer_pallas(wemb2, pemb2, params, num_heads,
                                compute_dtype=jnp.float32)
    out2 = jax.block_until_ready(out2)
    np.testing.assert_allclose(np.asarray(out2), np.asarray(ref2),
                               rtol=5e-3, atol=5e-3)

    print("KERNEL_OK")
</pallas_src>

<mosaic_0001>
module attributes {stable_mosaic.version = 11 : i64} {
  func.func @decoder_kernel(%arg0: i32, %arg1: memref<8x128xf32, #tpu.memory_space<vmem>>, %arg2: memref<8x128xf32, #tpu.memory_space<vmem>>, %arg3: memref<8x128xf32, #tpu.memory_space<vmem>>, %arg4: memref<4x128x8xf32, #tpu.memory_space<vmem>>, %arg5: memref<4x1x8xf32, #tpu.memory_space<vmem>>, %arg6: memref<4x128x8xf32, #tpu.memory_space<vmem>>, %arg7: memref<4x1x8xf32, #tpu.memory_space<vmem>>, %arg8: memref<4x128x8xf32, #tpu.memory_space<vmem>>, %arg9: memref<4x1x8xf32, #tpu.memory_space<vmem>>, %arg10: memref<4x8x128xf32, #tpu.memory_space<vmem>>, %arg11: memref<1x128xf32, #tpu.memory_space<vmem>>, %arg12: memref<128x128xf32, #tpu.memory_space<vmem>>, %arg13: memref<1x128xf32, #tpu.memory_space<vmem>>, %arg14: memref<128x128xf32, #tpu.memory_space<vmem>>, %arg15: memref<1x128xf32, #tpu.memory_space<vmem>>, %arg16: memref<8x128xf32, #tpu.memory_space<vmem>>) attributes {dimension_semantics = [#tpu.dimension_semantics<parallel>], iteration_bounds = array<i64: 1>, scalar_prefetch = 0 : i64, scratch_operands = 0 : i64, tpu.core_type = #tpu.core_type<tc>, window_params = [{transform_indices = @transform_0, window_bounds = array<i64: 8, 128>}, {transform_indices = @transform_1, window_bounds = array<i64: 8, 128>}, {pipeline_mode = #tpu.pipeline_mode<synchronous>, transform_indices = @transform_2, window_bounds = array<i64: 8, 128>}, {pipeline_mode = #tpu.pipeline_mode<synchronous>, transform_indices = @transform_3, window_bounds = array<i64: 4, 128, 8>}, {pipeline_mode = #tpu.pipeline_mode<synchronous>, transform_indices = @transform_4, window_bounds = array<i64: 4, 1, 8>}, {pipeline_mode = #tpu.pipeline_mode<synchronous>, transform_indices = @transform_5, window_bounds = array<i64: 4, 128, 8>}, {pipeline_mode = #tpu.pipeline_mode<synchronous>, transform_indices = @transform_6, window_bounds = array<i64: 4, 1, 8>}, {pipeline_mode = #tpu.pipeline_mode<synchronous>, transform_indices = @transform_7, window_bounds = array<i64: 4, 128, 8>}, {pipeline_mode = #tpu.pipeline_mode<synchronous>, transform_indices = @transform_8, window_bounds = array<i64: 4, 1, 8>}, {pipeline_mode = #tpu.pipeline_mode<synchronous>, transform_indices = @transform_9, window_bounds = array<i64: 4, 8, 128>}, {pipeline_mode = #tpu.pipeline_mode<synchronous>, transform_indices = @transform_10, window_bounds = array<i64: 1, 128>}, {pipeline_mode = #tpu.pipeline_mode<synchronous>, transform_indices = @transform_11, window_bounds = array<i64: 128, 128>}, {pipeline_mode = #tpu.pipeline_mode<synchronous>, transform_indices = @transform_12, window_bounds = array<i64: 1, 128>}, {pipeline_mode = #tpu.pipeline_mode<synchronous>, transform_indices = @transform_13, window_bounds = array<i64: 128, 128>}, {pipeline_mode = #tpu.pipeline_mode<synchronous>, transform_indices = @transform_14, window_bounds = array<i64: 1, 128>}, {transform_indices = @transform_15, window_bounds = array<i64: 8, 128>}]} {
    %c0 = arith.constant 0 : index
    %c0_0 = arith.constant 0 : index
    %0 = vector.load %arg1[%c0, %c0_0] : memref<8x128xf32, #tpu.memory_space<vmem>>, vector<8x128xf32>
    %c0_1 = arith.constant 0 : index
    %c0_2 = arith.constant 0 : index
    %1 = vector.load %arg2[%c0_1, %c0_2] : memref<8x128xf32, #tpu.memory_space<vmem>>, vector<8x128xf32>
    %2 = arith.addf %0, %1 : vector<8x128xf32>
    %c0_3 = arith.constant 0 : index
    %c0_4 = arith.constant 0 : index
    %3 = vector.load %arg3[%c0_3, %c0_4] : memref<8x128xf32, #tpu.memory_space<vmem>>, vector<8x128xf32>
    %4 = vector.shape_cast %2 : vector<8x128xf32> to vector<1x8x128xf32>
    %5 = vector.shape_cast %4 : vector<1x8x128xf32> to vector<1x8x128xf32>
    %6 = vector.broadcast %5 : vector<1x8x128xf32> to vector<4x8x128xf32>
    %7 = vector.shape_cast %3 : vector<8x128xf32> to vector<1x8x128xf32>
    %8 = vector.shape_cast %7 : vector<1x8x128xf32> to vector<1x8x128xf32>
    %9 = vector.broadcast %8 : vector<1x8x128xf32> to vector<4x8x128xf32>
    %c0_5 = arith.constant 0 : index
    %c0_6 = arith.constant 0 : index
    %c0_7 = arith.constant 0 : index
    %10 = vector.load %arg4[%c0_5, %c0_6, %c0_7] : memref<4x128x8xf32, #tpu.memory_space<vmem>>, vector<4x128x8xf32>
    "tpu.trace_start"() <{level = 10 : i32, message = "hqe,hed->hqd"}> : () -> ()
    %cst = arith.constant dense<0.000000e+00> : vector<4x8x8xf32>
    %11 = tpu.matmul %6, %10, %cst {dimension_numbers = #tpu.dot_dimension_numbers<[2], [1], [1], [2], [0, 0, 0, 1, 1, 2], [0], [0]>} : vector<4x8x128xf32>, vector<4x128x8xf32>, vector<4x8x8xf32> -> vector<4x8x8xf32>
    "tpu.trace_stop"() : () -> ()
    %c0_8 = arith.constant 0 : index
    %c0_9 = arith.constant 0 : index
    %c0_10 = arith.constant 0 : index
    %12 = vector.load %arg5[%c0_8, %c0_9, %c0_10] : memref<4x1x8xf32, #tpu.memory_space<vmem>>, vector<4x1x8xf32>
    %13 = vector.broadcast %12 : vector<4x1x8xf32> to vector<4x8x8xf32>
    %14 = arith.addf %11, %13 : vector<4x8x8xf32>
    %c0_11 = arith.constant 0 : index
    %c0_12 = arith.constant 0 : index
    %c0_13 = arith.constant 0 : index
    %15 = vector.load %arg6[%c0_11, %c0_12, %c0_13] : memref<4x128x8xf32, #tpu.memory_space<vmem>>, vector<4x128x8xf32>
    "tpu.trace_start"() <{level = 10 : i32, message = "hke,hed->hkd"}> : () -> ()
    %cst_14 = arith.constant dense<0.000000e+00> : vector<4x8x8xf32>
    %16 = tpu.matmul %9, %15, %cst_14 {dimension_numbers = #tpu.dot_dimension_numbers<[2], [1], [1], [2], [0, 0, 0, 1, 1, 2], [0], [0]>} : vector<4x8x128xf32>, vector<4x128x8xf32>, vector<4x8x8xf32> -> vector<4x8x8xf32>
    "tpu.trace_stop"() : () -> ()
    %c0_15 = arith.constant 0 : index
    %c0_16 = arith.constant 0 : index
    %c0_17 = arith.constant 0 : index
    %17 = vector.load %arg7[%c0_15, %c0_16, %c0_17] : memref<4x1x8xf32, #tpu.memory_space<vmem>>, vector<4x1x8xf32>
    %18 = vector.broadcast %17 : vector<4x1x8xf32> to vector<4x8x8xf32>
    %19 = arith.addf %16, %18 : vector<4x8x8xf32>
    %c0_18 = arith.constant 0 : index
    %c0_19 = arith.constant 0 : index
    %c0_20 = arith.constant 0 : index
    %20 = vector.load %arg8[%c0_18, %c0_19, %c0_20] : memref<4x128x8xf32, #tpu.memory_space<vmem>>, vector<4x128x8xf32>
    "tpu.trace_start"() <{level = 10 : i32, message = "hke,hed->hkd"}> : () -> ()
    %cst_21 = arith.constant dense<0.000000e+00> : vector<4x8x8xf32>
    %21 = tpu.matmul %9, %20, %cst_21 {dimension_numbers = #tpu.dot_dimension_numbers<[2], [1], [1], [2], [0, 0, 0, 1, 1, 2], [0], [0]>} : vector<4x8x128xf32>, vector<4x128x8xf32>, vector<4x8x8xf32> -> vector<4x8x8xf32>
    "tpu.trace_stop"() : () -> ()
    %c0_22 = arith.constant 0 : index
    %c0_23 = arith.constant 0 : index
    %c0_24 = arith.constant 0 : index
    %22 = vector.load %arg9[%c0_22, %c0_23, %c0_24] : memref<4x1x8xf32, #tpu.memory_space<vmem>>, vector<4x1x8xf32>
    %23 = vector.broadcast %22 : vector<4x1x8xf32> to vector<4x8x8xf32>
    %24 = arith.addf %21, %23 : vector<4x8x8xf32>
    "tpu.trace_start"() <{level = 10 : i32, message = "hqd,hkd->hqk"}> : () -> ()
    %cst_25 = arith.constant dense<0.000000e+00> : vector<4x8x8xf32>
    %25 = tpu.matmul %14, %19, %cst_25 {dimension_numbers = #tpu.dot_dimension_numbers<[2], [2], [1], [1], [0, 0, 0, 1, 1, 1], [0], [0]>} : vector<4x8x8xf32>, vector<4x8x8xf32>, vector<4x8x8xf32> -> vector<4x8x8xf32>
    "tpu.trace_stop"() : () -> ()
    %c8_i32 = arith.constant 8 : i32
    %26 = arith.muli %arg0, %c8_i32 : i32
    %27 = tpu.iota {dimensions = array<i32: 1>} : vector<4x8x8xi32>
    %28 = vector.broadcast %26 : i32 to vector<4x8x8xi32>
    %29 = arith.addi %27, %28 : vector<4x8x8xi32>
    %30 = tpu.iota {dimensions = array<i32: 2>} : vector<4x8x8xi32>
    %31 = arith.cmpi sgt, %30, %29 : vector<4x8x8xi32>
    %cst_26 = arith.constant -1.000000e+09 : f32
    %32 = vector.broadcast %cst_26 : f32 to vector<4x8x8xf32>
    %33 = arith.select %31, %32, %25 : vector<4x8x8xi1>, vector<4x8x8xf32>
    %cst_27 = arith.constant dense<0xFF800000> : vector<4x8xf32>
    %34 = vector.multi_reduction <maximumf>, %33, %cst_27 [2] : vector<4x8x8xf32> to vector<4x8xf32>
    %35 = vector.shape_cast %34 : vector<4x8xf32> to vector<4x8x1xf32>
    %36 = vector.broadcast %35 : vector<4x8x1xf32> to vector<4x8x8xf32>
    %37 = arith.subf %33, %36 : vector<4x8x8xf32>
    %38 = math.exp %37 : vector<4x8x8xf32>
    %cst_28 = arith.constant dense<0.000000e+00> : vector<4x8xf32>
    %39 = vector.multi_reduction <add>, %38, %cst_28 [2] : vector<4x8x8xf32> to vector<4x8xf32>
    %40 = vector.shape_cast %39 : vector<4x8xf32> to vector<4x8x1xf32>
    %41 = tpu.reciprocal %40 {approx = true} : vector<4x8x1xf32> -> vector<4x8x1xf32>
    %42 = vector.broadcast %41 : vector<4x8x1xf32> to vector<4x8x8xf32>
    %43 = arith.mulf %38, %42 : vector<4x8x8xf32>
    "tpu.trace_start"() <{level = 10 : i32, message = "hqk,hkd->hqd"}> : () -> ()
    %cst_29 = arith.constant dense<0.000000e+00> : vector<4x8x8xf32>
    %44 = tpu.matmul %43, %24, %cst_29 {dimension_numbers = #tpu.dot_dimension_numbers<[2], [1], [1], [2], [0, 0, 0, 1, 1, 2], [0], [0]>} : vector<4x8x8xf32>, vector<4x8x8xf32>, vector<4x8x8xf32> -> vector<4x8x8xf32>
    "tpu.trace_stop"() : () -> ()
    %c0_30 = arith.constant 0 : index
    %c0_31 = arith.constant 0 : index
    %c0_32 = arith.constant 0 : index
    %45 = vector.load %arg10[%c0_30, %c0_31, %c0_32] : memref<4x8x128xf32, #tpu.memory_space<vmem>>, vector<4x8x128xf32>
    "tpu.trace_start"() <{level = 10 : i32, message = "hqd,hde->hqe"}> : () -> ()
    %cst_33 = arith.constant dense<0.000000e+00> : vector<4x8x128xf32>
    %46 = tpu.matmul %44, %45, %cst_33 {dimension_numbers = #tpu.dot_dimension_numbers<[2], [1], [1], [2], [0, 0, 0, 1, 1, 2], [0], [0]>} : vector<4x8x8xf32>, vector<4x8x128xf32>, vector<4x8x128xf32> -> vector<4x8x128xf32>
    "tpu.trace_stop"() : () -> ()
    %cst_34 = arith.constant dense<0.000000e+00> : vector<8x128xf32>
    %47 = vector.multi_reduction <add>, %46, %cst_34 [0] : vector<4x8x128xf32> to vector<8x128xf32>
    %c0_35 = arith.constant 0 : index
    %c0_36 = arith.constant 0 : index
    %48 = vector.load %arg11[%c0_35, %c0_36] : memref<1x128xf32, #tpu.memory_space<vmem>>, vector<1x128xf32>
    %49 = vector.broadcast %48 : vector<1x128xf32> to vector<8x128xf32>
    %50 = arith.addf %47, %49 : vector<8x128xf32>
    %c0_37 = arith.constant 0 : index
    %c0_38 = arith.constant 0 : index
    %51 = vector.load %arg12[%c0_37, %c0_38] : memref<128x128xf32, #tpu.memory_space<vmem>>, vector<128x128xf32>
    %cst_39 = arith.constant dense<0.000000e+00> : vector<8x128xf32>
    %52 = tpu.matmul %50, %51, %cst_39 {dimension_numbers = #tpu.dot_dimension_numbers<[1], [0], [0], [1], [0, 0, 1, 1], [], []>} : vector<8x128xf32>, vector<128x128xf32>, vector<8x128xf32> -> vector<8x128xf32>
    %c0_40 = arith.constant 0 : index
    %c0_41 = arith.constant 0 : index
    %53 = vector.load %arg13[%c0_40, %c0_41] : memref<1x128xf32, #tpu.memory_space<vmem>>, vector<1x128xf32>
    %54 = vector.broadcast %53 : vector<1x128xf32> to vector<8x128xf32>
    %55 = arith.addf %52, %54 : vector<8x128xf32>
    %cst_42 = arith.constant 0.000000e+00 : f32
    %56 = vector.broadcast %cst_42 : f32 to vector<8x128xf32>
    %57 = arith.maximumf %55, %56 : vector<8x128xf32>
    %c0_43 = arith.constant 0 : index
    %c0_44 = arith.constant 0 : index
    %58 = vector.load %arg14[%c0_43, %c0_44] : memref<128x128xf32, #tpu.memory_space<vmem>>, vector<128x128xf32>
    %cst_45 = arith.constant dense<0.000000e+00> : vector<8x128xf32>
    %59 = tpu.matmul %57, %58, %cst_45 {dimension_numbers = #tpu.dot_dimension_numbers<[1], [0], [0], [1], [0, 0, 1, 1], [], []>} : vector<8x128xf32>, vector<128x128xf32>, vector<8x128xf32> -> vector<8x128xf32>
    %c0_46 = arith.constant 0 : index
    %c0_47 = arith.constant 0 : index
    %60 = vector.load %arg15[%c0_46, %c0_47] : memref<1x128xf32, #tpu.memory_space<vmem>>, vector<1x128xf32>
    %61 = vector.broadcast %60 : vector<1x128xf32> to vector<8x128xf32>
    %62 = arith.addf %59, %61 : vector<8x128xf32>
    %c0_48 = arith.constant 0 : index
    %c0_49 = arith.constant 0 : index
    %63 = vector.load %arg16[%c0_48, %c0_49] : memref<8x128xf32, #tpu.memory_space<vmem>>, vector<8x128xf32>
    tpu.vector_store %arg16[%c0_48, %c0_49], %62 {strides = array<i32>} : memref<8x128xf32, #tpu.memory_space<vmem>>, vector<8x128xf32>,
    return
  }
  func.func @transform_0(%arg0: i32) -> (i32, i32) {
    %c0_i32 = arith.constant 0 : i32
    %c0_i32_0 = arith.constant 0 : i32
    return %arg0, %c0_i32 : i32, i32
  }
  func.func @transform_1(%arg0: i32) -> (i32, i32) {
    %c0_i32 = arith.constant 0 : i32
    %c0_i32_0 = arith.constant 0 : i32
    return %arg0, %c0_i32 : i32, i32
  }
  func.func @transform_2(%arg0: i32) -> (i32, i32) {
    %c0_i32 = arith.constant 0 : i32
    %c0_i32_0 = arith.constant 0 : i32
    %c0_i32_1 = arith.constant 0 : i32
    return %c0_i32, %c0_i32_0 : i32, i32
  }
  func.func @transform_3(%arg0: i32) -> (i32, i32, i32) {
    %c0_i32 = arith.constant 0 : i32
    %c0_i32_0 = arith.constant 0 : i32
    %c0_i32_1 = arith.constant 0 : i32
    %c0_i32_2 = arith.constant 0 : i32
    return %c0_i32, %c0_i32_0, %c0_i32_1 : i32, i32, i32
  }
  func.func @transform_4(%arg0: i32) -> (i32, i32, i32) {
    %c0_i32 = arith.constant 0 : i32
    %c0_i32_0 = arith.constant 0 : i32
    %c0_i32_1 = arith.constant 0 : i32
    %c0_i32_2 = arith.constant 0 : i32
    return %c0_i32, %c0_i32_0, %c0_i32_1 : i32, i32, i32
  }
  func.func @transform_5(%arg0: i32) -> (i32, i32, i32) {
    %c0_i32 = arith.constant 0 : i32
    %c0_i32_0 = arith.constant 0 : i32
    %c0_i32_1 = arith.constant 0 : i32
    %c0_i32_2 = arith.constant 0 : i32
    return %c0_i32, %c0_i32_0, %c0_i32_1 : i32, i32, i32
  }
  func.func @transform_6(%arg0: i32) -> (i32, i32, i32) {
    %c0_i32 = arith.constant 0 : i32
    %c0_i32_0 = arith.constant 0 : i32
    %c0_i32_1 = arith.constant 0 : i32
    %c0_i32_2 = arith.constant 0 : i32
    return %c0_i32, %c0_i32_0, %c0_i32_1 : i32, i32, i32
  }
  func.func @transform_7(%arg0: i32) -> (i32, i32, i32) {
    %c0_i32 = arith.constant 0 : i32
    %c0_i32_0 = arith.constant 0 : i32
    %c0_i32_1 = arith.constant 0 : i32
    %c0_i32_2 = arith.constant 0 : i32
    return %c0_i32, %c0_i32_0, %c0_i32_1 : i32, i32, i32
  }
  func.func @transform_8(%arg0: i32) -> (i32, i32, i32) {
    %c0_i32 = arith.constant 0 : i32
    %c0_i32_0 = arith.constant 0 : i32
    %c0_i32_1 = arith.constant 0 : i32
    %c0_i32_2 = arith.constant 0 : i32
    return %c0_i32, %c0_i32_0, %c0_i32_1 : i32, i32, i32
  }
  func.func @transform_9(%arg0: i32) -> (i32, i32, i32) {
    %c0_i32 = arith.constant 0 : i32
    %c0_i32_0 = arith.constant 0 : i32
    %c0_i32_1 = arith.constant 0 : i32
    %c0_i32_2 = arith.constant 0 : i32
    return %c0_i32, %c0_i32_0, %c0_i32_1 : i32, i32, i32
  }
  func.func @transform_10(%arg0: i32) -> (i32, i32) {
    %c0_i32 = arith.constant 0 : i32
    %c0_i32_0 = arith.constant 0 : i32
    %c0_i32_1 = arith.constant 0 : i32
    return %c0_i32, %c0_i32_0 : i32, i32
  }
  func.func @transform_11(%arg0: i32) -> (i32, i32) {
    %c0_i32 = arith.constant 0 : i32
    %c0_i32_0 = arith.constant 0 : i32
    %c0_i32_1 = arith.constant 0 : i32
    return %c0_i32, %c0_i32_0 : i32, i32
  }
  func.func @transform_12(%arg0: i32) -> (i32, i32) {
    %c0_i32 = arith.constant 0 : i32
    %c0_i32_0 = arith.constant 0 : i32
    %c0_i32_1 = arith.constant 0 : i32
    return %c0_i32, %c0_i32_0 : i32, i32
  }
  func.func @transform_13(%arg0: i32) -> (i32, i32) {
    %c0_i32 = arith.constant 0 : i32
    %c0_i32_0 = arith.constant 0 : i32
    %c0_i32_1 = arith.constant 0 : i32
    return %c0_i32, %c0_i32_0 : i32, i32
  }
  func.func @transform_14(%arg0: i32) -> (i32, i32) {
    %c0_i32 = arith.constant 0 : i32
    %c0_i32_0 = arith.constant 0 : i32
    %c0_i32_1 = arith.constant 0 : i32
    return %c0_i32, %c0_i32_0 : i32, i32
  }
  func.func @transform_15(%arg0: i32) -> (i32, i32) {
    %c0_i32 = arith.constant 0 : i32
    %c0_i32_0 = arith.constant 0 : i32
    return %arg0, %c0_i32 : i32, i32
  }
}

</mosaic_0001>

<bundles_post_ra>
// kernel: tpu_custom_call.1
= control target key start
LH: loop header
LB: loop body
LE: loop exit
PB: predicated region body
PF: predicated region fallthrough
CT: control target
= control target key end

     0   :  { %s1920_s0 = inlined_call_operand.vmem [shape: f32[8,128], index: 0, kind: input, shape index: {}]   ;;  %s1921_s1 = inlined_call_operand.vmem [shape: f32[8,128], index: 1, kind: input, shape index: {}]   ;;  %s1922_s2 = inlined_call_operand.vmem [shape: f32[8,128], index: 2, kind: input, shape index: {}]   ;;  %s1923_s3 = inlined_call_operand.vmem [shape: f32[4,128,8], index: 3, kind: input, shape index: {}]   ;;  %s1924_s4 = inlined_call_operand.vmem [shape: f32[4,1,8], index: 4, kind: input, shape index: {}]   ;;  %s1925_s5 = inlined_call_operand.vmem [shape: f32[4,128,8], index: 5, kind: input, shape index: {}]   ;;  %s1926_s6 = inlined_call_operand.vmem [shape: f32[4,1,8], index: 6, kind: input, shape index: {}]   ;;  %s1927_s7 = inlined_call_operand.vmem [shape: f32[4,128,8], index: 7, kind: input, shape index: {}]   ;;  %s1928_s8 = inlined_call_operand.vmem [shape: f32[4,1,8], index: 8, kind: input, shape index: {}]   ;;  %s1929_s9 = inlined_call_operand.vmem [shape: f32[4,8,128], index: 9, kind: input, shape index: {}]   ;;  %s1930_s10 = inlined_call_operand.vmem [shape: f32[1,128], index: 10, kind: input, shape index: {}]   ;;  %s1931_s11 = inlined_call_operand.vmem [shape: f32[128,128], index: 11, kind: input, shape index: {}]   ;;  %s1932_s12 = inlined_call_operand.vmem [shape: f32[1,128], index: 12, kind: input, shape index: {}]   ;;  %s1933_s13 = inlined_call_operand.vmem [shape: f32[128,128], index: 13, kind: input, shape index: {}]   ;;  %s1934_s14 = inlined_call_operand.vmem [shape: f32[1,128], index: 14, kind: input, shape index: {}]   ;;  %s1935_s15 = inlined_call_operand.hbm [shape: f32[8,128], index: 15, kind: output, shape index: {}]  }
   0x1   :  { %v70_v0 = vld [vmem:[%s1923_s3 + $0x78] sm:$0xff]  ;;  %v69_v2 = vld [vmem:[%s1923_s3 + $0x70] sm:$0xff]  ;;  %v68_v6 = vld [vmem:[%s1923_s3 + $0x68] sm:$0xff] }
   0x2   :  { %v86_v1 = vld [vmem:[%s1923_s3 + $0xf8] sm:$0xff]  ;;  %135 = vmatpush.msra.mxu0 %v70_v0  ;;  %v85_v3 = vld [vmem:[%s1923_s3 + $0xf0] sm:$0xff]  ;;  %v84_v7 = vld [vmem:[%s1923_s3 + $0xe8] sm:$0xff] }
   0x3   :  { %155 = vmatpush.msra.mxu1 %v86_v1  ;;  %v102_v4 = vld [vmem:[%s1923_s3 + $0x178] sm:$0xff]  ;;  %v101_v8 = vld [vmem:[%s1923_s3 + $0x170] sm:$0xff]  ;;  %v67_v10 = vld [vmem:[%s1923_s3 + $0x60] sm:$0xff] }
   0x4   :  { %v118_v5 = vld [vmem:[%s1923_s3 + $0x1f8] sm:$0xff]  ;;  %175 = vmatpush.msra.mxu2 %v102_v4  ;;  %136 = vmatpush.msra.mxu0 %v69_v2  ;;  %v117_v9 = vld [vmem:[%s1923_s3 + $0x1f0] sm:$0xff]  ;;  %v83_v11 = vld [vmem:[%s1923_s3 + $0xe0] sm:$0xff] }
   0x5   :  { %195 = vmatpush.msra.mxu3 %v118_v5  ;;  %156 = vmatpush.msra.mxu1 %v85_v3  ;;  %v100_v12 = vld [vmem:[%s1923_s3 + $0x168] sm:$0xff]  ;;  %v99_v14 = vld [vmem:[%s1923_s3 + $0x160] sm:$0xff]  ;;  %v66_v16 = vld [vmem:[%s1923_s3 + $0x58] sm:$0xff] }
   0x6   :  { %176 = vmatpush.msra.mxu2 %v101_v8  ;;  %v116_v13 = vld [vmem:[%s1923_s3 + $0x1e8] sm:$0xff]  ;;  %137 = vmatpush.msra.mxu0 %v68_v6  ;;  %v115_v15 = vld [vmem:[%s1923_s3 + $0x1e0] sm:$0xff]  ;;  %v82_v17 = vld [vmem:[%s1923_s3 + $0xd8] sm:$0xff] }
   0x7   :  { %196 = vmatpush.msra.mxu3 %v117_v9  ;;  %157 = vmatpush.msra.mxu1 %v84_v7  ;;  %v98_v18 = vld [vmem:[%s1923_s3 + $0x158] sm:$0xff]  ;;  %v65_v20 = vld [vmem:[%s1923_s3 + $0x50] sm:$0xff]  ;;  %v64_v24 = vld [vmem:[%s1923_s3 + $0x48] sm:$0xff] }
   0x8   :  { %177 = vmatpush.msra.mxu2 %v100_v12  ;;  %138 = vmatpush.msra.mxu0 %v67_v10  ;;  %v114_v19 = vld [vmem:[%s1923_s3 + $0x1d8] sm:$0xff]  ;;  %v81_v21 = vld [vmem:[%s1923_s3 + $0xd0] sm:$0xff]  ;;  %v80_v25 = vld [vmem:[%s1923_s3 + $0xc8] sm:$0xff] }
   0x9   :  { %197 = vmatpush.msra.mxu3 %v116_v13  ;;  %158 = vmatpush.msra.mxu1 %v83_v11  ;;  %v97_v22 = vld [vmem:[%s1923_s3 + $0x150] sm:$0xff]  ;;  %v96_v26 = vld [vmem:[%s1923_s3 + $0x148] sm:$0xff]  ;;  %v63_v28 = vld [vmem:[%s1923_s3 + $0x40] sm:$0xff] }
   0xa   :  { %178 = vmatpush.msra.mxu2 %v99_v14  ;;  %139 = vmatpush.msra.mxu0 %v66_v16  ;;  %v113_v23 = vld [vmem:[%s1923_s3 + $0x1d0] sm:$0xff]  ;;  %v112_v27 = vld [vmem:[%s1923_s3 + $0x1c8] sm:$0xff]  ;;  %v79_v29 = vld [vmem:[%s1923_s3 + $0xc0] sm:$0xff] }
   0xb   :  { %198 = vmatpush.msra.mxu3 %v115_v15  ;;  %159 = vmatpush.msra.mxu1 %v82_v17  ;;  %v95_v30 = vld [vmem:[%s1923_s3 + $0x140] sm:$0xff]  ;;  %v62_v32 = vld [vmem:[%s1923_s3 + $0x38] sm:$0xff]  ;;  %v61_v36 = vld [vmem:[%s1923_s3 + $0x30] sm:$0xff] }
   0xc   :  { %179 = vmatpush.msra.mxu2 %v98_v18  ;;  %140 = vmatpush.msra.mxu0 %v65_v20  ;;  %v111_v31 = vld [vmem:[%s1923_s3 + $0x1c0] sm:$0xff]  ;;  %v78_v33 = vld [vmem:[%s1923_s3 + $0xb8] sm:$0xff]  ;;  %v77_v37 = vld [vmem:[%s1923_s3 + $0xb0] sm:$0xff] }
   0xd   :  { %199 = vmatpush.msra.mxu3 %v114_v19  ;;  %160 = vmatpush.msra.mxu1 %v81_v21  ;;  %v94_v34 = vld [vmem:[%s1923_s3 + $0x138] sm:$0xff]  ;;  %v93_v38 = vld [vmem:[%s1923_s3 + $0x130] sm:$0xff]  ;;  %v60_v40 = vld [vmem:[%s1923_s3 + $0x28] sm:$0xff] }
   0xe   :  { %180 = vmatpush.msra.mxu2 %v97_v22  ;;  %141 = vmatpush.msra.mxu0 %v64_v24  ;;  %v110_v35 = vld [vmem:[%s1923_s3 + $0x1b8] sm:$0xff]  ;;  %v109_v39 = vld [vmem:[%s1923_s3 + $0x1b0] sm:$0xff]  ;;  %v76_v41 = vld [vmem:[%s1923_s3 + $0xa8] sm:$0xff] }
   0xf   :  { %200 = vmatpush.msra.mxu3 %v113_v23  ;;  %161 = vmatpush.msra.mxu1 %v80_v25  ;;  %v92_v42 = vld [vmem:[%s1923_s3 + $0x128] sm:$0xff]  ;;  %v59_v44 = vld [vmem:[%s1923_s3 + $0x20] sm:$0xff]  ;;  %v58_v48 = vld [vmem:[%s1923_s3 + $0x18] sm:$0xff] }
  0x10   :  { %181 = vmatpush.msra.mxu2 %v96_v26  ;;  %142 = vmatpush.msra.mxu0 %v63_v28  ;;  %v108_v43 = vld [vmem:[%s1923_s3 + $0x1a8] sm:$0xff]  ;;  %v75_v45 = vld [vmem:[%s1923_s3 + $0xa0] sm:$0xff]  ;;  %v74_v49 = vld [vmem:[%s1923_s3 + $0x98] sm:$0xff] }
  0x11   :  { %201 = vmatpush.msra.mxu3 %v112_v27  ;;  %162 = vmatpush.msra.mxu1 %v79_v29  ;;  %v91_v46 = vld [vmem:[%s1923_s3 + $0x120] sm:$0xff]  ;;  %v90_v50 = vld [vmem:[%s1923_s3 + $0x118] sm:$0xff]  ;;  %v57_v52 = vld [vmem:[%s1923_s3 + $0x10] sm:$0xff] }
  0x12   :  { %182 = vmatpush.msra.mxu2 %v95_v30  ;;  %143 = vmatpush.msra.mxu0 %v62_v32  ;;  %v107_v47 = vld [vmem:[%s1923_s3 + $0x1a0] sm:$0xff]  ;;  %v106_v51 = vld [vmem:[%s1923_s3 + $0x198] sm:$0xff]  ;;  %v73_v53 = vld [vmem:[%s1923_s3 + $0x90] sm:$0xff] }
  0x13   :  { %202 = vmatpush.msra.mxu3 %v111_v31  ;;  %163 = vmatpush.msra.mxu1 %v78_v33  ;;  %v89_v54 = vld [vmem:[%s1923_s3 + $0x110] sm:$0xff]  ;;  %v56_v56 = vld [vmem:[%s1923_s3 + $0x8] sm:$0xff]  ;;  %v55_v60 = vld [vmem:[%s1923_s3] sm:$0xff] }
  0x14   :  { %183 = vmatpush.msra.mxu2 %v94_v34  ;;  %144 = vmatpush.msra.mxu0 %v61_v36  ;;  %v105_v55 = vld [vmem:[%s1923_s3 + $0x190] sm:$0xff]  ;;  %v72_v57 = vld [vmem:[%s1923_s3 + $0x88] sm:$0xff]  ;;  %v71_v61 = vld [vmem:[%s1923_s3 + $0x80] sm:$0xff] }
  0x15   :  { %203 = vmatpush.msra.mxu3 %v110_v35  ;;  %164 = vmatpush.msra.mxu1 %v77_v37  ;;  %v88_v58 = vld [vmem:[%s1923_s3 + $0x108] sm:$0xff]  ;;  %v230_v62 = vld [vmem:[%s1925_s5 + $0x78] sm:$0xff]  ;;  %v87_v0 = vld [vmem:[%s1923_s3 + $0x100] sm:$0xff] }
  0x16   :  { %184 = vmatpush.msra.mxu2 %v93_v38  ;;  %145 = vmatpush.msra.mxu0 %v60_v40  ;;  %v104_v59 = vld [vmem:[%s1923_s3 + $0x188] sm:$0xff]  ;;  %v246_v63 = vld [vmem:[%s1925_s5 + $0xf8] sm:$0xff]  ;;  %v103_v1 = vld [vmem:[%s1923_s3 + $0x180] sm:$0xff] }
  0x17   :  { %204 = vmatpush.msra.mxu3 %v109_v39  ;;  %165 = vmatpush.msra.mxu1 %v76_v41  ;;  %v229_v2 = vld [vmem:[%s1925_s5 + $0x70] sm:$0xff]  ;;  %v262_v4 = vld [vmem:[%s1925_s5 + $0x178] sm:$0xff]  ;;  %v228_v6 = vld [vmem:[%s1925_s5 + $0x68] sm:$0xff] }
  0x18   :  { %185 = vmatpush.msra.mxu2 %v92_v42  ;;  %146 = vmatpush.msra.mxu0 %v59_v44  ;;  %v245_v3 = vld [vmem:[%s1925_s5 + $0xf0] sm:$0xff]  ;;  %v278_v5 = vld [vmem:[%s1925_s5 + $0x1f8] sm:$0xff]  ;;  %v244_v7 = vld [vmem:[%s1925_s5 + $0xe8] sm:$0xff] }
  0x19   :  { %205 = vmatpush.msra.mxu3 %v108_v43  ;;  %166 = vmatpush.msra.mxu1 %v75_v45  ;;  %v261_v8 = vld [vmem:[%s1925_s5 + $0x170] sm:$0xff]  ;;  %v227_v10 = vld [vmem:[%s1925_s5 + $0x60] sm:$0xff]  ;;  %v260_v12 = vld [vmem:[%s1925_s5 + $0x168] sm:$0xff] }
  0x1a   :  { %186 = vmatpush.msra.mxu2 %v91_v46  ;;  %147 = vmatpush.msra.mxu0 %v58_v48  ;;  %v277_v9 = vld [vmem:[%s1925_s5 + $0x1f0] sm:$0xff]  ;;  %v243_v11 = vld [vmem:[%s1925_s5 + $0xe0] sm:$0xff]  ;;  %v276_v13 = vld [vmem:[%s1925_s5 + $0x1e8] sm:$0xff] }
  0x1b   :  { %206 = vmatpush.msra.mxu3 %v107_v47  ;;  %167 = vmatpush.msra.mxu1 %v74_v49  ;;  %v226_v14 = vld [vmem:[%s1925_s5 + $0x58] sm:$0xff]  ;;  %v259_v16 = vld [vmem:[%s1925_s5 + $0x160] sm:$0xff]  ;;  %v225_v18 = vld [vmem:[%s1925_s5 + $0x50] sm:$0xff] }
  0x1c   :  { %187 = vmatpush.msra.mxu2 %v90_v50  ;;  %148 = vmatpush.msra.mxu0 %v57_v52  ;;  %v242_v15 = vld [vmem:[%s1925_s5 + $0xd8] sm:$0xff]  ;;  %v275_v17 = vld [vmem:[%s1925_s5 + $0x1e0] sm:$0xff]  ;;  %v241_v19 = vld [vmem:[%s1925_s5 + $0xd0] sm:$0xff] }
  0x1d   :  { %207 = vmatpush.msra.mxu3 %v106_v51  ;;  %168 = vmatpush.msra.mxu1 %v73_v53  ;;  %v258_v20 = vld [vmem:[%s1925_s5 + $0x158] sm:$0xff]  ;;  %v224_v22 = vld [vmem:[%s1925_s5 + $0x48] sm:$0xff]  ;;  %v257_v24 = vld [vmem:[%s1925_s5 + $0x150] sm:$0xff] }
  0x1e   :  { %188 = vmatpush.msra.mxu2 %v89_v54  ;;  %149 = vmatpush.msra.mxu0 %v56_v56  ;;  %v274_v21 = vld [vmem:[%s1925_s5 + $0x1d8] sm:$0xff]  ;;  %v240_v23 = vld [vmem:[%s1925_s5 + $0xc8] sm:$0xff]  ;;  %v273_v25 = vld [vmem:[%s1925_s5 + $0x1d0] sm:$0xff] }
  0x1f   :  { %208 = vmatpush.msra.mxu3 %v105_v55  ;;  %169 = vmatpush.msra.mxu1 %v72_v57  ;;  %v223_v26 = vld [vmem:[%s1925_s5 + $0x40] sm:$0xff]  ;;  %v256_v28 = vld [vmem:[%s1925_s5 + $0x148] sm:$0xff]  ;;  %v222_v30 = vld [vmem:[%s1925_s5 + $0x38] sm:$0xff] }
  0x20   :  { %189 = vmatpush.msra.mxu2 %v88_v58  ;;  %150 = vmatpush.msra.mxu0 %v55_v60  ;;  %v239_v27 = vld [vmem:[%s1925_s5 + $0xc0] sm:$0xff]  ;;  %v272_v29 = vld [vmem:[%s1925_s5 + $0x1c8] sm:$0xff]  ;;  %v238_v31 = vld [vmem:[%s1925_s5 + $0xb8] sm:$0xff] }
  0x21   :  { %209 = vmatpush.msra.mxu3 %v104_v59  ;;  %170 = vmatpush.msra.mxu1 %v71_v61  ;;  %v255_v32 = vld [vmem:[%s1925_s5 + $0x140] sm:$0xff]  ;;  %v221_v34 = vld [vmem:[%s1925_s5 + $0x30] sm:$0xff]  ;;  %v254_v36 = vld [vmem:[%s1925_s5 + $0x138] sm:$0xff] }
  0x22   :  { %295 = vmatpush.msrb.mxu0 %v230_v62  ;;  %190 = vmatpush.msra.mxu2 %v87_v0  ;;  %v271_v33 = vld [vmem:[%s1925_s5 + $0x1c0] sm:$0xff]  ;;  %v237_v35 = vld [vmem:[%s1925_s5 + $0xb0] sm:$0xff]  ;;  %v270_v37 = vld [vmem:[%s1925_s5 + $0x1b8] sm:$0xff] }
  0x23   :  { %315 = vmatpush.msrb.mxu1 %v246_v63  ;;  %210 = vmatpush.msra.mxu3 %v103_v1  ;;  %v220_v38 = vld [vmem:[%s1925_s5 + $0x28] sm:$0xff]  ;;  %v253_v40 = vld [vmem:[%s1925_s5 + $0x130] sm:$0xff]  ;;  %v219_v42 = vld [vmem:[%s1925_s5 + $0x20] sm:$0xff] }
  0x24   :  { %296 = vmatpush.msrb.mxu0 %v229_v2  ;;  %335 = vmatpush.msrb.mxu2 %v262_v4  ;;  %v236_v39 = vld [vmem:[%s1925_s5 + $0xa8] sm:$0xff]  ;;  %v269_v41 = vld [vmem:[%s1925_s5 + $0x1b0] sm:$0xff]  ;;  %v51_v43 = vld [vmem:[%s1920_s0] sm:$0xff] }
  0x25   :  { %316 = vmatpush.msrb.mxu1 %v245_v3  ;;  %355 = vmatpush.msrb.mxu3 %v278_v5  ;;  %v52_v44 = vld [vmem:[%s1921_s1] sm:$0xff]  ;;  %v252_v46 = vld [vmem:[%s1925_s5 + $0x128] sm:$0xff]  ;;  %v218_v49 = vld [vmem:[%s1925_s5 + $0x18] sm:$0xff] }
  0x26   :  { %297 = vmatpush.msrb.mxu0 %v228_v6  ;;  %336 = vmatpush.msrb.mxu2 %v261_v8  ;;  %v235_v45 = vld [vmem:[%s1925_s5 + $0xa0] sm:$0xff]  ;;  %v268_v47 = vld [vmem:[%s1925_s5 + $0x1a8] sm:$0xff]  ;;  %v53_v48 = vadd.f32 %v52_v44, %v51_v43  ;;  %v234_v50 = vld [vmem:[%s1925_s5 + $0x98] sm:$0xff] }
  0x27   :  { %317 = vmatpush.msrb.mxu1 %v244_v7  ;;  %356 = vmatpush.msrb.mxu3 %v277_v9  ;;  %v251_v51 = vld [vmem:[%s1925_s5 + $0x120] sm:$0xff]  ;;  %v217_v53 = vld [vmem:[%s1925_s5 + $0x10] sm:$0xff]  ;;  %v250_v55 = vld [vmem:[%s1925_s5 + $0x118] sm:$0xff] }
  0x28   :  { %298 = vmatpush.msrb.mxu0 %v227_v10  ;;  %337 = vmatpush.msrb.mxu2 %v260_v12  ;;  %v267_v52 = vld [vmem:[%s1925_s5 + $0x1a0] sm:$0xff]  ;;  %v233_v54 = vld [vmem:[%s1925_s5 + $0x90] sm:$0xff]  ;;  %v266_v56 = vld [vmem:[%s1925_s5 + $0x198] sm:$0xff] }
  0x29   :  { %318 = vmatpush.msrb.mxu1 %v243_v11  ;;  %357 = vmatpush.msrb.mxu3 %v276_v13  ;;  %v216_v57 = vld [vmem:[%s1925_s5 + $0x8] sm:$0xff]  ;;  %v249_v59 = vld [vmem:[%s1925_s5 + $0x110] sm:$0xff]  ;;  %v215_v61 = vld [vmem:[%s1925_s5] sm:$0xff] }
  0x2a   :  { %299 = vmatpush.msrb.mxu0 %v226_v14  ;;  %338 = vmatpush.msrb.mxu2 %v259_v16  ;;  %v232_v58 = vld [vmem:[%s1925_s5 + $0x88] sm:$0xff]  ;;  %v265_v60 = vld [vmem:[%s1925_s5 + $0x190] sm:$0xff]  ;;  %v231_v62 = vld [vmem:[%s1925_s5 + $0x80] sm:$0xff] }
  0x2b   :  { %319 = vmatpush.msrb.mxu1 %v242_v15  ;;  %358 = vmatpush.msrb.mxu3 %v275_v17 }
  0x2c   :  { %300 = vmatpush.msrb.mxu0 %v225_v18  ;;  %339 = vmatpush.msrb.mxu2 %v258_v20 }
  0x2d   :  { %320 = vmatpush.msrb.mxu1 %v241_v19  ;;  %359 = vmatpush.msrb.mxu3 %v274_v21 }
  0x2e   :  { %301 = vmatpush.msrb.mxu0 %v224_v22  ;;  %340 = vmatpush.msrb.mxu2 %v257_v24 }
  0x2f   :  { %321 = vmatpush.msrb.mxu1 %v240_v23  ;;  %360 = vmatpush.msrb.mxu3 %v273_v25 }
  0x30   :  { %302 = vmatpush.msrb.mxu0 %v223_v26  ;;  %341 = vmatpush.msrb.mxu2 %v256_v28 }
  0x31   :  { %322 = vmatpush.msrb.mxu1 %v239_v27  ;;  %361 = vmatpush.msrb.mxu3 %v272_v29 }
  0x32   :  { %303 = vmatpush.msrb.mxu0 %v222_v30  ;;  %342 = vmatpush.msrb.mxu2 %v255_v32 }
  0x33   :  { %323 = vmatpush.msrb.mxu1 %v238_v31  ;;  %362 = vmatpush.msrb.mxu3 %v271_v33 }
  0x34   :  { %304 = vmatpush.msrb.mxu0 %v221_v34  ;;  %343 = vmatpush.msrb.mxu2 %v254_v36 }
  0x35   :  { %324 = vmatpush.msrb.mxu1 %v237_v35  ;;  %363 = vmatpush.msrb.mxu3 %v270_v37 }
  0x36   :  { %305 = vmatpush.msrb.mxu0 %v220_v38  ;;  %344 = vmatpush.msrb.mxu2 %v253_v40 }
  0x37   :  { %325 = vmatpush.msrb.mxu1 %v236_v39  ;;  %364 = vmatpush.msrb.mxu3 %v269_v41 }
  0x38   :  { %306 = vmatpush.msrb.mxu0 %v219_v42  ;;  %345 = vmatpush.msrb.mxu2 %v252_v46 }
  0x39   :  { %326 = vmatpush.msrb.mxu1 %v235_v45  ;;  %365 = vmatpush.msrb.mxu3 %v268_v47 }
  0x3a   :  { %151 = vmatmul.f32.vlgmr.msra.gmra.mxu0 %v53_v48  ;;  %171 = vmatmul.f32.vlgmr.msra.gmra.mxu1 %v53_v48 }
  0x3b   :  { %307 = vmatpush.msrb.mxu0 %v218_v49  ;;  %327 = vmatpush.msrb.mxu1 %v234_v50 }
  0x3c   :  { %346 = vmatpush.msrb.mxu2 %v251_v51  ;;  %366 = vmatpush.msrb.mxu3 %v267_v52 }
  0x3d   :  { %191 = vmatmul.f32.vlgmr.msra.gmra.mxu2 %v53_v48  ;;  %211 = vmatmul.f32.vlgmr.msra.gmra.mxu3 %v53_v48 }
  0x3e   :  { %308 = vmatpush.msrb.mxu0 %v217_v53  ;;  %328 = vmatpush.msrb.mxu1 %v233_v54 }
  0x3f   :  { %347 = vmatpush.msrb.mxu2 %v250_v55  ;;  %367 = vmatpush.msrb.mxu3 %v266_v56 }
  0x40   :  { %20 = vsyncpa [#allocation3], 0  ;;  %309 = vmatpush.msrb.mxu0 %v216_v57  ;;  %329 = vmatpush.msrb.mxu1 %v232_v58  ;;  %v248_v63 = vld [vmem:[%s1925_s5 + $0x108] sm:$0xff]  ;;  %v1532_v1 = vld [vmem:[%s1922_s2] sm:$0xff]  ;;  %vm535_vm0 = vcmask 64512   ;;  %s981_s21 = sshll.u32 %s1935_s15, 4  ;;  %s982_s21 = int_to_ptr.hbm [resolvable:$true] %s981_s21 }
  0x41   :  { %v264_v0 = vld [vmem:[%s1925_s5 + $0x188] sm:$0xff]  ;;  %348 = vmatpush.msrb.mxu2 %v249_v59  ;;  %368 = vmatpush.msrb.mxu3 %v265_v60  ;;  %v247_v2 = vld [vmem:[%s1925_s5 + $0x100] sm:$0xff]  ;;  %v422_v4 = vld [vmem:[%s1927_s7 + $0x178] sm:$0xff] }
  0x42   :  { %310 = vmatpush.msrb.mxu0 %v215_v61  ;;  %330 = vmatpush.msrb.mxu1 %v231_v62  ;;  %v263_v3 = vld [vmem:[%s1925_s5 + $0x180] sm:$0xff]  ;;  %v438_v5 = vld [vmem:[%s1927_s7 + $0x1f8] sm:$0xff]  ;;  %v421_v8 = vld [vmem:[%s1927_s7 + $0x170] sm:$0xff] }
  0x43   :  { %349 = vmatpush.msrb.mxu2 %v248_v63  ;;  %369 = vmatpush.msrb.mxu3 %v264_v0  ;;  %v390_v6 = vld [vmem:[%s1927_s7 + $0x78] sm:$0xff]  ;;  %v437_v9 = vld [vmem:[%s1927_s7 + $0x1f0] sm:$0xff]  ;;  %v420_v12 = vld [vmem:[%s1927_s7 + $0x168] sm:$0xff] }
  0x44   :  { %311 = vmatmul.f32.vlgmr.msrb.gmra.mxu0 %v1532_v1  ;;  %331 = vmatmul.f32.vlgmr.msrb.gmra.mxu1 %v1532_v1  ;;  %v406_v7 = vld [vmem:[%s1927_s7 + $0xf8] sm:$0xff]  ;;  %v389_v10 = vld [vmem:[%s1927_s7 + $0x70] sm:$0xff]  ;;  %v436_v13 = vld [vmem:[%s1927_s7 + $0x1e8] sm:$0xff] }
  0x45   :  { %350 = vmatpush.msrb.mxu2 %v247_v2  ;;  %370 = vmatpush.msrb.mxu3 %v263_v3  ;;  %v405_v11 = vld [vmem:[%s1927_s7 + $0xf0] sm:$0xff]  ;;  %v388_v14 = vld [vmem:[%s1927_s7 + $0x68] sm:$0xff]  ;;  %v419_v16 = vld [vmem:[%s1927_s7 + $0x160] sm:$0xff] }
  0x46   :  { %351 = vmatmul.f32.vlgmr.msrb.gmra.mxu2 %v1532_v1  ;;  %371 = vmatmul.f32.vlgmr.msrb.gmra.mxu3 %v1532_v1  ;;  %v404_v15 = vld [vmem:[%s1927_s7 + $0xe8] sm:$0xff]  ;;  %v435_v17 = vld [vmem:[%s1927_s7 + $0x1e0] sm:$0xff]  ;;  %v418_v20 = vld [vmem:[%s1927_s7 + $0x158] sm:$0xff] }
  0x47   :  { %495 = vmatpush.msra.mxu2 %v422_v4  ;;  %515 = vmatpush.msra.mxu3 %v438_v5  ;;  %v387_v18 = vld [vmem:[%s1927_s7 + $0x60] sm:$0xff]  ;;  %v434_v21 = vld [vmem:[%s1927_s7 + $0x1d8] sm:$0xff]  ;;  %v417_v23 = vld [vmem:[%s1927_s7 + $0x150] sm:$0xff] }
  0x48   :  { %455 = vmatpush.msra.mxu0 %v390_v6  ;;  %475 = vmatpush.msra.mxu1 %v406_v7  ;;  %v403_v19 = vld [vmem:[%s1927_s7 + $0xe0] sm:$0xff]  ;;  %v386_v22 = vld [vmem:[%s1927_s7 + $0x58] sm:$0xff]  ;;  %v433_v24 = vld [vmem:[%s1927_s7 + $0x1d0] sm:$0xff] }
  0x49   :  { %496 = vmatpush.msra.mxu2 %v421_v8  ;;  %516 = vmatpush.msra.mxu3 %v437_v9  ;;  %v385_v25 = vld [vmem:[%s1927_s7 + $0x50] sm:$0xff]  ;;  %v416_v26 = vld [vmem:[%s1927_s7 + $0x148] sm:$0xff]  ;;  %v415_v29 = vld [vmem:[%s1927_s7 + $0x140] sm:$0xff] }
  0x4a   :  { %456 = vmatpush.msra.mxu0 %v389_v10  ;;  %476 = vmatpush.msra.mxu1 %v405_v11  ;;  %v432_v27 = vld [vmem:[%s1927_s7 + $0x1c8] sm:$0xff]  ;;  %v431_v30 = vld [vmem:[%s1927_s7 + $0x1c0] sm:$0xff]  ;;  %v414_v32 = vld [vmem:[%s1927_s7 + $0x138] sm:$0xff] }
  0x4b   :  { %497 = vmatpush.msra.mxu2 %v420_v12  ;;  %517 = vmatpush.msra.mxu3 %v436_v13  ;;  %v384_v28 = vld [vmem:[%s1927_s7 + $0x48] sm:$0xff]  ;;  %v383_v31 = vld [vmem:[%s1927_s7 + $0x40] sm:$0xff]  ;;  %v430_v33 = vld [vmem:[%s1927_s7 + $0x1b8] sm:$0xff] }
  0x4c   :  { %457 = vmatpush.msra.mxu0 %v388_v14  ;;  %477 = vmatpush.msra.mxu1 %v404_v15  ;;  %v413_v34 = vld [vmem:[%s1927_s7 + $0x130] sm:$0xff]  ;;  %v412_v36 = vld [vmem:[%s1927_s7 + $0x128] sm:$0xff]  ;;  %v411_v38 = vld [vmem:[%s1927_s7 + $0x120] sm:$0xff] }
  0x4d   :  { %498 = vmatpush.msra.mxu2 %v419_v16  ;;  %518 = vmatpush.msra.mxu3 %v435_v17  ;;  %v429_v35 = vld [vmem:[%s1927_s7 + $0x1b0] sm:$0xff]  ;;  %v428_v37 = vld [vmem:[%s1927_s7 + $0x1a8] sm:$0xff]  ;;  %v427_v39 = vld [vmem:[%s1927_s7 + $0x1a0] sm:$0xff] }
  0x4e   :  { %458 = vmatpush.msra.mxu0 %v387_v18  ;;  %478 = vmatpush.msra.mxu1 %v403_v19  ;;  %v410_v40 = vld [vmem:[%s1927_s7 + $0x118] sm:$0xff]  ;;  %v381_v44 = vld [vmem:[%s1927_s7 + $0x30] sm:$0xff]  ;;  %v408_v48 = vld [vmem:[%s1927_s7 + $0x108] sm:$0xff] }
  0x4f   :  { %499 = vmatpush.msra.mxu2 %v418_v20  ;;  %519 = vmatpush.msra.mxu3 %v434_v21  ;;  %v426_v41 = vld [vmem:[%s1927_s7 + $0x198] sm:$0xff]  ;;  %v401_v45 = vld [vmem:[%s1927_s7 + $0xd0] sm:$0xff]  ;;  %v424_v49 = vld [vmem:[%s1927_s7 + $0x188] sm:$0xff] }
  0x50   :  { %459 = vmatpush.msra.mxu0 %v386_v22  ;;  %v382_v42 = vld [vmem:[%s1927_s7 + $0x38] sm:$0xff]  ;;  %v409_v46 = vld [vmem:[%s1927_s7 + $0x110] sm:$0xff]  ;;  %v380_v50 = vld [vmem:[%s1927_s7 + $0x28] sm:$0xff] }
  0x51   :  { %500 = vmatpush.msra.mxu2 %v417_v23  ;;  %520 = vmatpush.msra.mxu3 %v433_v24  ;;  %v402_v43 = vld [vmem:[%s1927_s7 + $0xd8] sm:$0xff]  ;;  %v425_v47 = vld [vmem:[%s1927_s7 + $0x190] sm:$0xff]  ;;  %v400_v51 = vld [vmem:[%s1927_s7 + $0xc8] sm:$0xff] }
  0x52   :  { %460 = vmatpush.msra.mxu0 %v385_v25  ;;  %479 = vmatpush.msra.mxu1 %v402_v43  ;;  %v407_v52 = vld [vmem:[%s1927_s7 + $0x100] sm:$0xff]  ;;  %v378_v56 = vld [vmem:[%s1927_s7 + $0x18] sm:$0xff]  ;;  %v377_v58 = vld [vmem:[%s1927_s7 + $0x10] sm:$0xff] }
  0x53   :  { %501 = vmatpush.msra.mxu2 %v416_v26  ;;  %521 = vmatpush.msra.mxu3 %v432_v27  ;;  %v423_v53 = vld [vmem:[%s1927_s7 + $0x180] sm:$0xff]  ;;  %v398_v57 = vld [vmem:[%s1927_s7 + $0xb8] sm:$0xff]  ;;  %v397_v59 = vld [vmem:[%s1927_s7 + $0xb0] sm:$0xff] }
  0x54   :  { %461 = vmatpush.msra.mxu0 %v384_v28  ;;  %480 = vmatpush.msra.mxu1 %v401_v45  ;;  %v379_v54 = vld [vmem:[%s1927_s7 + $0x20] sm:$0xff]  ;;  %v376_v60 = vld [vmem:[%s1927_s7 + $0x8] sm:$0xff]  ;;  %v394_v0 = vld [vmem:[%s1927_s7 + $0x98] sm:$0xff] }
  0x55   :  { %502 = vmatpush.msra.mxu2 %v415_v29  ;;  %522 = vmatpush.msra.mxu3 %v431_v30  ;;  %v399_v55 = vld [vmem:[%s1927_s7 + $0xc0] sm:$0xff]  ;;  %v396_v61 = vld [vmem:[%s1927_s7 + $0xa8] sm:$0xff]  ;;  %v393_v2 = vld [vmem:[%s1927_s7 + $0x90] sm:$0xff] }
  0x56   :  { %462 = vmatpush.msra.mxu0 %v383_v31  ;;  %481 = vmatpush.msra.mxu1 %v400_v51  ;;  %v375_v62 = vld [vmem:[%s1927_s7] sm:$0xff]  ;;  %v392_v3 = vld [vmem:[%s1927_s7 + $0x88] sm:$0xff] }
  0x57   :  { %503 = vmatpush.msra.mxu2 %v414_v32  ;;  %523 = vmatpush.msra.mxu3 %v430_v33  ;;  %v395_v63 = vld [vmem:[%s1927_s7 + $0xa0] sm:$0xff] }
  0x58   :  { %463 = vmatpush.msra.mxu0 %v382_v42  ;;  %482 = vmatpush.msra.mxu1 %v399_v55  ;;  %v391_v4 = vld [vmem:[%s1927_s7 + $0x80] sm:$0xff] }
  0x59   :  { %504 = vmatpush.msra.mxu2 %v413_v34  ;;  %524 = vmatpush.msra.mxu3 %v429_v35  ;;  %v1011_v7 = vld [vmem:[%s1926_s6] ss:$0 sm:$0xff]  ;;  %v1012_v8 = vld [vmem:[%s1926_s6 + $0x1] ss:$0 sm:$0xff]  ;;  %v1013_v18 = vld [vmem:[%s1926_s6 + $0x2] ss:$0 sm:$0xff] }
  0x5a   :  { %464 = vmatpush.msra.mxu0 %v381_v44  ;;  %483 = vmatpush.msra.mxu1 %v398_v57  ;;  %v1007_v11 = vld [vmem:[%s1924_s4] ss:$0 sm:$0xff]  ;;  %v1014_v19 = vld [vmem:[%s1926_s6 + $0x3] ss:$0 sm:$0xff]  ;;  %v1009_v20 = vld [vmem:[%s1924_s4 + $0x2] ss:$0 sm:$0xff] }
  0x5b   :  { %505 = vmatpush.msra.mxu2 %v412_v36  ;;  %525 = vmatpush.msra.mxu3 %v428_v37  ;;  %v1010_v21 = vld [vmem:[%s1924_s4 + $0x3] ss:$0 sm:$0xff]  ;;  %v1015_v28 = vld [vmem:[%s1928_s8 + $0x2] ss:$0 sm:$0xff]  ;;  %v1017_v29 = vld [vmem:[%s1928_s8] ss:$0 sm:$0xff] }
  0x5c   :  { %465 = vmatpush.msra.mxu0 %v380_v50  ;;  %484 = vmatpush.msra.mxu1 %v397_v59  ;;  %v1016_v34 = vld [vmem:[%s1928_s8 + $0x3] ss:$0 sm:$0xff]  ;;  %v1018_v35 = vld [vmem:[%s1928_s8 + $0x1] ss:$0 sm:$0xff]  ;;  %s1064_s8 = smov [#allocation2]  }
  0x5d   :  { %506 = vmatpush.msra.mxu2 %v411_v38  ;;  %526 = vmatpush.msra.mxu3 %v427_v39  ;;  %s979_s18 = sshll.u32 %s1064_s8, 4  ;;  %s980_s18 = int_to_ptr.vmem [resolvable:$true] %s979_s18 }
  0x5e   :  { %466 = vmatpush.msra.mxu0 %v379_v54  ;;  %485 = vmatpush.msra.mxu1 %v396_v61 }
  0x5f   :  { %507 = vmatpush.msra.mxu2 %v410_v40  ;;  %527 = vmatpush.msra.mxu3 %v426_v41  ;;  %v641_v40 = vlaneseq }
  0x60   :  { %467 = vmatpush.msra.mxu0 %v378_v56  ;;  %486 = vmatpush.msra.mxu1 %v395_v63 }
  0x61   :  { %508 = vmatpush.msra.mxu2 %v409_v46  ;;  %528 = vmatpush.msra.mxu3 %v425_v47  ;;  %v642_v41 = vshrl.u32 %v641_v40, 7  ;;  %v646_v42 = vand.u32 127, %v641_v40  ;;  %v898_v40 = vld [vmem:[%s1931_s11 + $0x30] sm:$0xff] }
  0x62   :  { %468 = vmatpush.msra.mxu0 %v377_v58  ;;  %487 = vmatpush.msra.mxu1 %v394_v0 }
  0x63   :  { %509 = vmatpush.msra.mxu2 %v408_v48  ;;  %529 = vmatpush.msra.mxu3 %v424_v49  ;;  %vm647_vm1 = vcmp.gt.s32.totalorder %v646_v42, %v642_v41  ;;  %v897_v41 = vld [vmem:[%s1931_s11 + $0x28] sm:$0xff]  ;;  %v896_v42 = vld [vmem:[%s1931_s11 + $0x20] sm:$0xff] }
  0x64   :  { %469 = vmatpush.msra.mxu0 %v376_v60  ;;  %488 = vmatpush.msra.mxu1 %v393_v2 }
  0x65   :  { %510 = vmatpush.msra.mxu2 %v407_v52  ;;  %530 = vmatpush.msra.mxu3 %v423_v53 }
  0x66   :  { %511 = vmatmul.f32.vlgmr.msra.gmra.mxu2 %v1532_v1  ;;  %531 = vmatmul.f32.vlgmr.msra.gmra.mxu3 %v1532_v1 }
  0x67   :  { %470 = vmatpush.msra.mxu0 %v375_v62  ;;  %489 = vmatpush.msra.mxu1 %v392_v3 }
  0x68   :  { %471 = vmatmul.f32.vlgmr.msra.gmra.mxu0 %v1532_v1 }
  0x69   :  { %490 = vmatpush.msra.mxu1 %v391_v4 }
  0x6a   :  { %491 = vmatmul.f32.vlgmr.msra.gmra.mxu1 %v1532_v1  ;;  %v1008_v1 = vld [vmem:[%s1924_s4 + $0x1] ss:$0 sm:$0xff] }
  0xb7   :  { %v152_v5 = vpop.f32.mrf.mxu0  ;;  %v172_v6 = vpop.f32.mrf.mxu1 }
  0xb8   :  { %v153_v16 = vadd.f32 %v1007_v11, %v152_v5  ;;  %v173_v17 = vadd.f32 %v1008_v1, %v172_v6 }
  0xc0   :  { %v192_v9 = vpop.f32.mrf.mxu2  ;;  %v212_v10 = vpop.f32.mrf.mxu3 }
  0xc1   :  { %v312_v12 = vpop.f32.mrf.mxu0  ;;  %v332_v13 = vpop.f32.mrf.mxu1  ;;  %v193_v26 = vadd.f32 %v1009_v20, %v192_v9  ;;  %v213_v27 = vadd.f32 %v1010_v21, %v212_v10 }
  0xc2   :  { %v313_v14 = vadd.f32 %v1011_v7, %v312_v12  ;;  %v333_v15 = vadd.f32 %v1012_v8, %v332_v13 }
  0xc4   :  { %990 = vmatpush.xpose.msk.msrb.mxu2 %vm535_vm0, %v313_v14  ;;  %992 = vmatpush.xpose.msk.msrb.mxu3 %vm535_vm0, %v333_v15 }
  0xc7   :  { %991 = vmatmul.msk.f32.vlgmr.msrb.gmra.mxu2 %vm535_vm0, %v153_v16  ;;  %993 = vmatmul.msk.f32.vlgmr.msrb.gmra.mxu3 %vm535_vm0, %v173_v17 }
  0xc9   :  { %v352_v22 = vpop.f32.mrf.mxu2  ;;  %v372_v23 = vpop.f32.mrf.mxu3 }
  0xca   :  { %v353_v24 = vadd.f32 %v1013_v18, %v352_v22  ;;  %v373_v25 = vadd.f32 %v1014_v19, %v372_v23  ;;  %v788_v23 = vld [vmem:[%s1929_s9] sm:$0xff] }
  0xcb   :  { %810 = vmatpush.msrb.mxu0 %v788_v23 }
  0xcc   :  { %994 = vmatpush.xpose.msk.msra.mxu2 %vm535_vm0, %v353_v24  ;;  %996 = vmatpush.xpose.msk.msra.mxu3 %vm535_vm0, %v373_v25  ;;  %v789_v24 = vld [vmem:[%s1929_s9 + $0x8] sm:$0xff]  ;;  %v790_v25 = vld [vmem:[%s1929_s9 + $0x10] sm:$0xff] }
  0xcd   :  { %833 = vmatpush.msrb.mxu1 %v789_v24 }
  0xcf   :  { %995 = vmatmul.msk.f32.vlgmr.msra.gmra.mxu2 %vm535_vm0, %v193_v26  ;;  %997 = vmatmul.msk.f32.vlgmr.msra.gmra.mxu3 %vm535_vm0, %v213_v27  ;;  %v791_v26 = vld [vmem:[%s1929_s9 + $0x18] sm:$0xff] }
  0xd0   :  { %v907_v27 = vld [vmem:[%s1931_s11 + $0x78] sm:$0xff] }
  0xd1   :  { %912 = vmatpush.msra.mxu0 %v907_v27 }
  0xe5   :  { %v472_v32 = vpop.f32.mrf.mxu0 }
  0xe6   :  { %v473_v33 = vadd.f32 %v1017_v29, %v472_v32 }
  0xe7   :  { %v492_v38 = vpop.f32.mrf.mxu1 }
  0xe8   :  { %714 = vmatpush.msrb.mxu2 %v473_v33  ;;  %v493_v39 = vadd.f32 %v1018_v35, %v492_v38  ;;  %v905_v33 = vld [vmem:[%s1931_s11 + $0x68] sm:$0xff]  ;;  %v903_v35 = vld [vmem:[%s1931_s11 + $0x58] sm:$0xff]  ;;  %v900_v38 = vld [vmem:[%s1931_s11 + $0x40] sm:$0xff] }
  0xe9   :  { %v512_v30 = vpop.f32.mrf.mxu2  ;;  %v532_v36 = vpop.f32.mrf.mxu3 }
  0xea   :  { %v513_v31 = vadd.f32 %v1015_v28, %v512_v30  ;;  %v533_v37 = vadd.f32 %v1016_v34, %v532_v36  ;;  %737 = vmatpush.msrb.mxu3 %v493_v39  ;;  %v906_v28 = vld [vmem:[%s1931_s11 + $0x70] sm:$0xff]  ;;  %v904_v34 = vld [vmem:[%s1931_s11 + $0x60] sm:$0xff]  ;;  %v899_v39 = vld [vmem:[%s1931_s11 + $0x38] sm:$0xff] }
  0xeb   :  { %913 = vmatpush.msra.mxu0 %v906_v28  ;;  %v902_v36 = vld [vmem:[%s1931_s11 + $0x50] sm:$0xff] }
  0xec   :  { %760 = vmatpush.msra.mxu2 %v513_v31  ;;  %783 = vmatpush.msra.mxu3 %v533_v37  ;;  %v901_v37 = vld [vmem:[%s1931_s11 + $0x48] sm:$0xff] }
  0xed   :  { %914 = vmatpush.msra.mxu0 %v905_v33 }
  0xef   :  { %915 = vmatpush.msra.mxu0 %v904_v34 }
  0xf1   :  { %916 = vmatpush.msra.mxu0 %v903_v35 }
  0xf3   :  { %917 = vmatpush.msra.mxu0 %v902_v36 }
  0xf5   :  { %918 = vmatpush.msra.mxu0 %v901_v37 }
  0xf7   :  { %919 = vmatpush.msra.mxu0 %v900_v38 }
  0xf9   :  { %920 = vmatpush.msra.mxu0 %v899_v39 }
  0xfb   :  { %921 = vmatpush.msra.mxu0 %v898_v40 }
  0xfd   :  { %922 = vmatpush.msra.mxu0 %v897_v41 }
  0xff   :  { %923 = vmatpush.msra.mxu0 %v896_v42 }
 0x14a   :  { %v559_v43 = vpop.f32.mrf.mxu2  ;;  %v585_v45 = vpop.f32.mrf.mxu3 }
 0x14b   :  { %v648_v44 = vsel %vm647_vm1, -1e+09, %v559_v43  ;;  %v649_v47 = vsel %vm647_vm1, -1e+09, %v585_v45  ;;  %v895_v43 = vld [vmem:[%s1931_s11 + $0x18] sm:$0xff]  ;;  %v893_v45 = vld [vmem:[%s1931_s11 + $0x8] sm:$0xff] }
 0x14c   :  { %v652_v46 = vsel %vm535_vm0, %v648_v44, -inf  ;;  %v655_v50 = vsel %vm535_vm0, %v649_v47, -inf  ;;  %924 = vmatpush.msra.mxu0 %v895_v43 }
 0x14d   :  { %653 = vmax.xlane.f32.xlu0 %v652_v46  ;;  %v892_v46 = vld [vmem:[%s1931_s11] sm:$0xff] }
 0x152   :  { %v611_v48 = vpop.f32.mrf.mxu2  ;;  %v637_v52 = vpop.f32.mrf.mxu3 }
 0x153   :  { %v650_v49 = vsel %vm647_vm1, -1e+09, %v611_v48  ;;  %v651_v53 = vsel %vm647_vm1, -1e+09, %v637_v52  ;;  %v947_v48 = vld [vmem:[%s1933_s13 + $0x70] sm:$0xff] }
 0x154   :  { %v658_v51 = vsel %vm535_vm0, %v650_v49, -inf  ;;  %v661_v54 = vsel %vm535_vm0, %v651_v53, -inf  ;;  %v943_v52 = vld [vmem:[%s1933_s13 + $0x50] sm:$0xff] }
 0x155   :  { %656 = vmax.xlane.f32.xlu0 %v655_v50  ;;  %659 = vmax.xlane.f32.xlu1 %v658_v51  ;;  %v945_v50 = vld [vmem:[%s1933_s13 + $0x60] sm:$0xff]  ;;  %v944_v51 = vld [vmem:[%s1933_s13 + $0x58] sm:$0xff] }
 0x15d   :  { %662 = vmax.xlane.f32.xlu1 %v661_v54  ;;  %v941_v54 = vld [vmem:[%s1933_s13 + $0x40] sm:$0xff] }
 0x1c0   :  { %v654_v55 = vpop.xlane.xlu0 %653 }
 0x1c1   :  { %v664_v56 = vsub.f32 %v648_v44, %v654_v55  ;;  %v894_v44 = vld [vmem:[%s1931_s11 + $0x10] sm:$0xff]  ;;  %v940_v55 = vld [vmem:[%s1933_s13 + $0x38] sm:$0xff] }
 0x1c2   :  { %925 = vmatpush.msra.mxu0 %v894_v44 }
 0x1c3   :  { %v668_v57 = vmul.f32 1.442695, %v664_v56  ;;  %v939_v56 = vld [vmem:[%s1933_s13 + $0x30] sm:$0xff] }
 0x1c4   :  { %926 = vmatpush.msra.mxu0 %v893_v45 }
 0x1c5   :  { %1022 = vpow2.f32 %v668_v57  ;;  %v938_v57 = vld [vmem:[%s1933_s13 + $0x28] sm:$0xff] }
 0x1c6   :  { %927 = vmatpush.msra.mxu0 %v892_v46 }
 0x1c8   :  { %v657_v58 = vpop.xlane.xlu0 %656  ;;  %v660_v59 = vpop.xlane.xlu1 %659 }
 0x1c9   :  { %v665_v60 = vsub.f32 %v649_v47, %v657_v58  ;;  %v666_v61 = vsub.f32 %v650_v49, %v660_v59  ;;  %v948_v47 = vld [vmem:[%s1933_s13 + $0x78] sm:$0xff]  ;;  %v946_v49 = vld [vmem:[%s1933_s13 + $0x68] sm:$0xff]  ;;  %v937_v58 = vld [vmem:[%s1933_s13 + $0x20] sm:$0xff] }
 0x1ca   :  { %953 = vmatpush.msra.mxu1 %v948_v47 }
 0x1cb   :  { %v1023_v62 = vpop.eup %1022  ;;  %v670_v63 = vmul.f32 1.442695, %v665_v60  ;;  %v672_v0 = vmul.f32 1.442695, %v666_v61  ;;  %v936_v60 = vld [vmem:[%s1933_s13 + $0x18] sm:$0xff] }
 0x1cc   :  { %v676_v2 = vsel %vm535_vm0, %v1023_v62, 0.0  ;;  %954 = vmatpush.msra.mxu1 %v947_v48 }
 0x1cd   :  { %1024 = vpow2.f32 %v670_v63  ;;  %677 = vadd.xlane.f32.xlu2 %v676_v2  ;;  %v1019_v2 = vld [vmem:[%s1930_s10] ss:$0 sm:$0xff] }
 0x1ce   :  { %1026 = vpow2.f32 %v672_v0  ;;  %955 = vmatpush.msra.mxu1 %v946_v49 }
 0x1d0   :  { %v663_v3 = vpop.xlane.xlu1 %662  ;;  %956 = vmatpush.msra.mxu1 %v945_v50 }
 0x1d1   :  { %v667_v4 = vsub.f32 %v651_v53, %v663_v3  ;;  %v942_v53 = vld [vmem:[%s1933_s13 + $0x48] sm:$0xff] }
 0x1d2   :  { %957 = vmatpush.msra.mxu1 %v944_v51 }
 0x1d3   :  { %v1025_v5 = vpop.eup %1024  ;;  %v674_v6 = vmul.f32 1.442695, %v667_v4 }
 0x1d4   :  { %v1027_v7 = vpop.eup %1026  ;;  %v679_v8 = vsel %vm535_vm0, %v1025_v5, 0.0  ;;  %958 = vmatpush.msra.mxu1 %v943_v52 }
 0x1d5   :  { %1028 = vpow2.f32 %v674_v6  ;;  %680 = vadd.xlane.f32.xlu2 %v679_v8  ;;  %v682_v9 = vsel %vm535_vm0, %v1027_v7, 0.0  ;;  %v935_v6 = vld [vmem:[%s1933_s13 + $0x10] sm:$0xff]  ;;  %v933_v8 = vld [vmem:[%s1933_s13] sm:$0xff] }
 0x1d6   :  { %683 = vadd.xlane.f32.xlu0 %v682_v9  ;;  %959 = vmatpush.msra.mxu1 %v942_v53  ;;  %v1020_v9 = vld [vmem:[%s1932_s12] ss:$0 sm:$0xff] }
 0x1d8   :  { %960 = vmatpush.msra.mxu1 %v941_v54 }
 0x1da   :  { %961 = vmatpush.msra.mxu1 %v940_v55 }
 0x1db   :  { %v1029_v10 = vpop.eup %1028 }
 0x1dc   :  { %v685_v11 = vsel %vm535_vm0, %v1029_v10, 0.0  ;;  %962 = vmatpush.msra.mxu1 %v939_v56 }
 0x1dd   :  { %686 = vadd.xlane.f32.xlu1 %v685_v11 }
 0x1de   :  { %963 = vmatpush.msra.mxu1 %v938_v57 }
 0x1e0   :  { %964 = vmatpush.msra.mxu1 %v937_v58 }
 0x1e2   :  { %965 = vmatpush.msra.mxu1 %v936_v60 }
 0x1e4   :  { %966 = vmatpush.msra.mxu1 %v935_v6 }
 0x240   :  { %v678_v1 = vpop.xlane.xlu2 %677 }
 0x241   :  { %1030 = vrcp.f32 %v678_v1 }
 0x247   :  { %v1031_v12 = vpop.eup %1030 }
 0x248   :  { %v692_v13 = vmul.f32 %v1031_v12, %v1023_v62  ;;  %v681_v14 = vpop.xlane.xlu2 %680  ;;  %v1021_v12 = vld [vmem:[%s1934_s14] ss:$0 sm:$0xff] }
 0x249   :  { %1032 = vrcp.f32 %v681_v14  ;;  %v684_v15 = vpop.xlane.xlu0 %683 }
 0x24a   :  { %1034 = vrcp.f32 %v684_v15  ;;  %998 = vmatmul.msk.f32.vlgmr.msrb.gmra.mxu2 %vm535_vm0, %v692_v13 }
 0x24b   :  { %856 = vmatpush.msrb.mxu2 %v790_v25 }
 0x24f   :  { %v1033_v16 = vpop.eup %1032 }
 0x250   :  { %v1035_v17 = vpop.eup %1034  ;;  %v693_v18 = vmul.f32 %v1033_v16, %v1025_v5  ;;  %v687_v19 = vpop.xlane.xlu1 %686 }
 0x251   :  { %v694_v20 = vmul.f32 %v1035_v17, %v1027_v7  ;;  %1036 = vrcp.f32 %v687_v19  ;;  %v934_v7 = vld [vmem:[%s1933_s13 + $0x8] sm:$0xff] }
 0x252   :  { %999 = vmatmul.msk.f32.vlgmr.msrb.gmra.mxu3 %vm535_vm0, %v693_v18  ;;  %967 = vmatpush.msra.mxu1 %v934_v7 }
 0x253   :  { %1000 = vmatmul.msk.f32.vlgmr.msra.gmra.mxu2 %vm535_vm0, %v694_v20  ;;  %879 = vmatpush.msrb.mxu3 %v791_v26 }
 0x254   :  { %968 = vmatpush.msra.mxu1 %v933_v8 }
 0x257   :  { %v1037_v21 = vpop.eup %1036 }
 0x258   :  { %v695_v22 = vmul.f32 %v1037_v21, %v1029_v10 }
 0x25a   :  { %1001 = vmatmul.msk.f32.vlgmr.msra.gmra.mxu3 %vm535_vm0, %v695_v22 }
 0x2cd   :  { %v716_v29 = vpop.f32.mrf.mxu2 }
 0x2ce   :  { %1002 = vmatmul.msk.f32.vlgmr.msrb.gmra.mxu0 %vm535_vm0, %v716_v29 }
 0x2d5   :  { %v739_v30 = vpop.f32.mrf.mxu3 }
 0x2d6   :  { %v762_v31 = vpop.f32.mrf.mxu2  ;;  %1003 = vmatmul.msk.f32.vlgmr.msrb.gmra.mxu1 %vm535_vm0, %v739_v30 }
 0x2d7   :  { %1004 = vmatmul.msk.f32.vlgmr.msrb.gmra.mxu2 %vm535_vm0, %v762_v31 }
 0x2dd   :  { %v785_v32 = vpop.f32.mrf.mxu3 }
 0x2de   :  { %1005 = vmatmul.msk.f32.vlgmr.msrb.gmra.mxu3 %vm535_vm0, %v785_v32 }
 0x34b   :  { %v812_v61 = vpop.f32.mrf.mxu0 }
 0x353   :  { %v835_v59 = vpop.f32.mrf.mxu1 }
 0x354   :  { %v884_v63 = vadd.f32 %v835_v59, %v812_v61 }
 0x35a   :  { %v858_v62 = vpop.f32.mrf.mxu2 }
 0x35b   :  { %v885_v0 = vadd.f32 %v884_v63, %v858_v62 }
 0x361   :  { %v881_v3 = vpop.f32.mrf.mxu3 }
 0x362   :  { %v886_v4 = vadd.f32 %v885_v0, %v881_v3 }
 0x364   :  { %v891_v5 = vadd.f32 %v1019_v2, %v886_v4 }
 0x366   :  { %928 = vmatmul.f32.vlgmr.msra.gmra.mxu0 %v891_v5 }
 0x3e3   :  { %v929_v10 = vpop.f32.mrf.mxu0 }
 0x3e4   :  { %v930_v11 = vadd.f32 %v1020_v9, %v929_v10 }
 0x3e6   :  { %v932_v1 = vmax.f32 %v930_v11, 0.0 }
 0x3e8   :  { %969 = vmatmul.f32.vlgmr.msra.gmra.mxu1 %v932_v1 }
 0x465   :  { %v970_v13 = vpop.f32.mrf.mxu1 }
 0x466   :  { %v971_v14 = vadd.f32 %v1021_v12, %v970_v13 }
 0x468   :  { %973 = vst [vmem:[#allocation2] sm:$0xff] %v971_v14 }
 0x469   :  { %984 = dma.vmem_to_hbm [thread:$0]  %s980_s18, 128, %s982_s21, [#allocation3]  }
 0x46a   :  { %1062 = dma.done.wait [#allocation3], 128  }
 0x46b   :  { %1063 = vsyncadd [#allocation3], 4294967168 }
 0x46c   :  { %989 = vsyncpa [#allocation3], 1 }

</bundles_post_ra>
